<compile_context>
chip_gen: v7x
topology: tpu7x:2x2x1
jax: 0.10.0
libtpu: 0.0.40
codegen_flags: <defaults>
</compile_context>

<pallas_src>
import jax
import jax.numpy as jnp
from jax.experimental import pallas as pl
from jax.experimental.pallas import tpu as pltpu


def _mlp_kernel(w0_ref, b0_ref, w1_ref, b1_ref, x_ref, o_ref):
    # x_ref: [4, TB] f32 in VMEM (batch on the lane axis).
    # w0_ref: [2, 4], b0_ref: [2], w1_ref: [1, 2], b1_ref: [1] -- SMEM scalars.
    x = x_ref[...]                      # [4, TB]
    x0 = x[0:1, :]                      # [1, TB] per-feature rows
    x1 = x[1:2, :]
    x2 = x[2:3, :]
    x3 = x[3:4, :]

    # Hidden layer (Linear(4, 2)) + ReLU, pure VPU broadcast-MACs.
    h0 = (w0_ref[0, 0] * x0 + w0_ref[0, 1] * x1 +
          w0_ref[0, 2] * x2 + w0_ref[0, 3] * x3 + b0_ref[0])
    h1 = (w0_ref[1, 0] * x0 + w0_ref[1, 1] * x1 +
          w0_ref[1, 2] * x2 + w0_ref[1, 3] * x3 + b0_ref[1])
    zero = jnp.float32(0.0)
    h0 = jnp.maximum(h0, zero)
    h1 = jnp.maximum(h1, zero)

    # Output layer (Linear(2, 1)).
    y = w1_ref[0, 0] * h0 + w1_ref[0, 1] * h1 + b1_ref[0]   # [1, TB]
    o_ref[...] = y.astype(o_ref.dtype)                       # lane-dense store


def _round_up(n, m):
    return ((n + m - 1) // m) * m


def mymodel_forward(x, w0, b0, w1, b1, *, max_tile=1024):
    """x: [B, 4] f32; w0: [2, 4]; b0: [2]; w1: [1, 2]; b1: [1] -> [B, 1] f32.

    Weight layouts match torch.nn.Linear (weight is [out, in]); math is
    y = l1(relu(l0(x))) with x @ w.T + b semantics.
    """
    x = x.astype(jnp.float32)
    B = x.shape[0]

    # Transpose so batch lies on the lane axis; pad batch to the lane tile.
    x_t = x.T                                    # [4, B]
    tb = min(max_tile, _round_up(max(B, 1), 128))  # lane tile, multiple of 128
    Bp = _round_up(B, tb)
    if Bp != B:
        x_t = jnp.pad(x_t, ((0, 0), (0, Bp - B)))

    grid = (Bp // tb,)

    smem_spec = pl.BlockSpec(memory_space=pltpu.MemorySpace.SMEM)

    out_t = pl.pallas_call(
        _mlp_kernel,
        out_shape=jax.ShapeDtypeStruct((1, Bp), jnp.float32),
        grid_spec=pltpu.PrefetchScalarGridSpec(
            num_scalar_prefetch=0,
            grid=grid,
            in_specs=[
                smem_spec,                                   # w0 [2, 4]
                smem_spec,                                   # b0 [2]
                smem_spec,                                   # w1 [1, 2]
                smem_spec,                                   # b1 [1]
                pl.BlockSpec((4, tb), lambda i: (0, i)),     # x_t tile [4, TB]
            ],
            out_specs=pl.BlockSpec((1, tb), lambda i: (0, i)),
        ),
        compiler_params=pltpu.CompilerParams(
            dimension_semantics=("parallel",),               # megacore on v7x
        ),
    )(w0.astype(jnp.float32), b0.astype(jnp.float32),
      w1.astype(jnp.float32), b1.astype(jnp.float32), x_t)

    # Back to the PyTorch layout [B, 1]; drop batch padding.
    return out_t[:, :B].T


def reference_forward(x, w0, b0, w1, b1):
    h = jnp.maximum(x @ w0.T + b0, 0.0)
    return h @ w1.T + b1


if __name__ == "__main__":
    key = jax.random.PRNGKey(0)
    kx, k0, kb0, k1, kb1 = jax.random.split(key, 5)

    batch = 8
    # Parameters in torch.nn.Linear layout: weight [out, in], bias [out].
    w0 = jax.random.normal(k0, (2, 4), dtype=jnp.float32) * 0.5
    b0 = jax.random.normal(kb0, (2,), dtype=jnp.float32) * 0.1
    w1 = jax.random.normal(k1, (1, 2), dtype=jnp.float32) * 0.5
    b1 = jax.random.normal(kb1, (1,), dtype=jnp.float32) * 0.1

    x = jax.random.normal(kx, (batch, 4), dtype=jnp.float32)

    out = mymodel_forward(x, w0, b0, w1, b1)
    out = jax.block_until_ready(out)

    ref = reference_forward(x, w0, b0, w1, b1)
    assert out.shape == (batch, 1), out.shape
    assert jnp.allclose(out, ref, atol=1e-5, rtol=1e-5), (out, ref)

    print("KERNEL_OK")
</pallas_src>

<mosaic_0001>
module attributes {stable_mosaic.version = 11 : i64} {
  func.func @_mlp_kernel(%arg0: i32, %arg1: memref<2x4xf32, #tpu.memory_space<smem>>, %arg2: memref<2xf32, #tpu.memory_space<smem>>, %arg3: memref<1x2xf32, #tpu.memory_space<smem>>, %arg4: memref<1xf32, #tpu.memory_space<smem>>, %arg5: memref<4x128xf32, #tpu.memory_space<vmem>>, %arg6: memref<1x128xf32, #tpu.memory_space<vmem>>) attributes {dimension_semantics = [#tpu.dimension_semantics<parallel>], iteration_bounds = array<i64: 1>, scalar_prefetch = 0 : i64, scratch_operands = 0 : i64, tpu.core_type = #tpu.core_type<tc>, window_params = [{transform_indices = @transform_0, window_bounds = array<i64: 2, 4>}, {transform_indices = @transform_1, window_bounds = array<i64: 2>}, {transform_indices = @transform_2, window_bounds = array<i64: 1, 2>}, {transform_indices = @transform_3, window_bounds = array<i64: 1>}, {transform_indices = @transform_4, window_bounds = array<i64: 4, 128>}, {transform_indices = @transform_5, window_bounds = array<i64: 1, 128>}]} {
    %c0 = arith.constant 0 : index
    %c0_0 = arith.constant 0 : index
    %0 = vector.load %arg5[%c0, %c0_0] : memref<4x128xf32, #tpu.memory_space<vmem>>, vector<4x128xf32>
    %1 = vector.extract_strided_slice %0 {offsets = [0, 0], sizes = [1, 128], strides = [1, 1]} : vector<4x128xf32> to vector<1x128xf32>
    %2 = vector.extract_strided_slice %0 {offsets = [1, 0], sizes = [1, 128], strides = [1, 1]} : vector<4x128xf32> to vector<1x128xf32>
    %3 = vector.extract_strided_slice %0 {offsets = [2, 0], sizes = [1, 128], strides = [1, 1]} : vector<4x128xf32> to vector<1x128xf32>
    %4 = vector.extract_strided_slice %0 {offsets = [3, 0], sizes = [1, 128], strides = [1, 1]} : vector<4x128xf32> to vector<1x128xf32>
    %c0_1 = arith.constant 0 : index
    %c0_2 = arith.constant 0 : index
    %5 = memref.load %arg1[%c0_1, %c0_2] : memref<2x4xf32, #tpu.memory_space<smem>>
    %6 = vector.broadcast %5 : f32 to vector<1x128xf32>
    %7 = arith.mulf %6, %1 : vector<1x128xf32>
    %c0_3 = arith.constant 0 : index
    %c1 = arith.constant 1 : index
    %8 = memref.load %arg1[%c0_3, %c1] : memref<2x4xf32, #tpu.memory_space<smem>>
    %9 = vector.broadcast %8 : f32 to vector<1x128xf32>
    %10 = arith.mulf %9, %2 : vector<1x128xf32>
    %11 = arith.addf %7, %10 : vector<1x128xf32>
    %c0_4 = arith.constant 0 : index
    %c2 = arith.constant 2 : index
    %12 = memref.load %arg1[%c0_4, %c2] : memref<2x4xf32, #tpu.memory_space<smem>>
    %13 = vector.broadcast %12 : f32 to vector<1x128xf32>
    %14 = arith.mulf %13, %3 : vector<1x128xf32>
    %15 = arith.addf %11, %14 : vector<1x128xf32>
    %c0_5 = arith.constant 0 : index
    %c3 = arith.constant 3 : index
    %16 = memref.load %arg1[%c0_5, %c3] : memref<2x4xf32, #tpu.memory_space<smem>>
    %17 = vector.broadcast %16 : f32 to vector<1x128xf32>
    %18 = arith.mulf %17, %4 : vector<1x128xf32>
    %19 = arith.addf %15, %18 : vector<1x128xf32>
    %c0_6 = arith.constant 0 : index
    %20 = memref.load %arg2[%c0_6] : memref<2xf32, #tpu.memory_space<smem>>
    %21 = vector.broadcast %20 : f32 to vector<1x128xf32>
    %22 = arith.addf %19, %21 : vector<1x128xf32>
    %c1_7 = arith.constant 1 : index
    %c0_8 = arith.constant 0 : index
    %23 = memref.load %arg1[%c1_7, %c0_8] : memref<2x4xf32, #tpu.memory_space<smem>>
    %24 = vector.broadcast %23 : f32 to vector<1x128xf32>
    %25 = arith.mulf %24, %1 : vector<1x128xf32>
    %c1_9 = arith.constant 1 : index
    %c1_10 = arith.constant 1 : index
    %26 = memref.load %arg1[%c1_9, %c1_10] : memref<2x4xf32, #tpu.memory_space<smem>>
    %27 = vector.broadcast %26 : f32 to vector<1x128xf32>
    %28 = arith.mulf %27, %2 : vector<1x128xf32>
    %29 = arith.addf %25, %28 : vector<1x128xf32>
    %c1_11 = arith.constant 1 : index
    %c2_12 = arith.constant 2 : index
    %30 = memref.load %arg1[%c1_11, %c2_12] : memref<2x4xf32, #tpu.memory_space<smem>>
    %31 = vector.broadcast %30 : f32 to vector<1x128xf32>
    %32 = arith.mulf %31, %3 : vector<1x128xf32>
    %33 = arith.addf %29, %32 : vector<1x128xf32>
    %c1_13 = arith.constant 1 : index
    %c3_14 = arith.constant 3 : index
    %34 = memref.load %arg1[%c1_13, %c3_14] : memref<2x4xf32, #tpu.memory_space<smem>>
    %35 = vector.broadcast %34 : f32 to vector<1x128xf32>
    %36 = arith.mulf %35, %4 : vector<1x128xf32>
    %37 = arith.addf %33, %36 : vector<1x128xf32>
    %c1_15 = arith.constant 1 : index
    %38 = memref.load %arg2[%c1_15] : memref<2xf32, #tpu.memory_space<smem>>
    %39 = vector.broadcast %38 : f32 to vector<1x128xf32>
    %40 = arith.addf %37, %39 : vector<1x128xf32>
    %cst = arith.constant 0.000000e+00 : f32
    %41 = vector.broadcast %cst : f32 to vector<1x128xf32>
    %42 = arith.maximumf %22, %41 : vector<1x128xf32>
    %cst_16 = arith.constant 0.000000e+00 : f32
    %43 = vector.broadcast %cst_16 : f32 to vector<1x128xf32>
    %44 = arith.maximumf %40, %43 : vector<1x128xf32>
    %c0_17 = arith.constant 0 : index
    %c0_18 = arith.constant 0 : index
    %45 = memref.load %arg3[%c0_17, %c0_18] : memref<1x2xf32, #tpu.memory_space<smem>>
    %46 = vector.broadcast %45 : f32 to vector<1x128xf32>
    %47 = arith.mulf %46, %42 : vector<1x128xf32>
    %c0_19 = arith.constant 0 : index
    %c1_20 = arith.constant 1 : index
    %48 = memref.load %arg3[%c0_19, %c1_20] : memref<1x2xf32, #tpu.memory_space<smem>>
    %49 = vector.broadcast %48 : f32 to vector<1x128xf32>
    %50 = arith.mulf %49, %44 : vector<1x128xf32>
    %51 = arith.addf %47, %50 : vector<1x128xf32>
    %c0_21 = arith.constant 0 : index
    %52 = memref.load %arg4[%c0_21] : memref<1xf32, #tpu.memory_space<smem>>
    %53 = vector.broadcast %52 : f32 to vector<1x128xf32>
    %54 = arith.addf %51, %53 : vector<1x128xf32>
    %c0_22 = arith.constant 0 : index
    %c0_23 = arith.constant 0 : index
    %55 = vector.load %arg6[%c0_22, %c0_23] : memref<1x128xf32, #tpu.memory_space<vmem>>, vector<1x128xf32>
    tpu.vector_store %arg6[%c0_22, %c0_23], %54 {strides = array<i32>} : memref<1x128xf32, #tpu.memory_space<vmem>>, vector<1x128xf32>,
    return
  }
  func.func @transform_0(%arg0: i32) -> (i32, i32) {
    %c0_i32 = arith.constant 0 : i32
    %c0_i32_0 = arith.constant 0 : i32
    %c0_i32_1 = arith.constant 0 : i32
    return %c0_i32, %c0_i32_0 : i32, i32
  }
  func.func @transform_1(%arg0: i32) -> i32 {
    %c0_i32 = arith.constant 0 : i32
    %c0_i32_0 = arith.constant 0 : i32
    return %c0_i32 : i32
  }
  func.func @transform_2(%arg0: i32) -> (i32, i32) {
    %c0_i32 = arith.constant 0 : i32
    %c0_i32_0 = arith.constant 0 : i32
    %c0_i32_1 = arith.constant 0 : i32
    return %c0_i32, %c0_i32_0 : i32, i32
  }
  func.func @transform_3(%arg0: i32) -> i32 {
    %c0_i32 = arith.constant 0 : i32
    %c0_i32_0 = arith.constant 0 : i32
    return %c0_i32 : i32
  }
  func.func @transform_4(%arg0: i32) -> (i32, i32) {
    %c0_i32 = arith.constant 0 : i32
    %c0_i32_0 = arith.constant 0 : i32
    return %c0_i32, %arg0 : i32, i32
  }
  func.func @transform_5(%arg0: i32) -> (i32, i32) {
    %c0_i32 = arith.constant 0 : i32
    %c0_i32_0 = arith.constant 0 : i32
    return %c0_i32, %arg0 : i32, i32
  }
}

</mosaic_0001>

<bundles_post_ra>
// kernel: tpu_custom_call.1
= control target key start
LH: loop header
LB: loop body
LE: loop exit
PB: predicated region body
PF: predicated region fallthrough
CT: control target
= control target key end

     0   :  { %11 = vsyncpa [#allocation5], 0  ;;  %s280_s0 = inlined_call_operand.vmem [shape: f32[2,4], index: 0, kind: input, shape index: {}]   ;;  %s281_s1 = inlined_call_operand.vmem [shape: f32[2], index: 1, kind: input, shape index: {}]   ;;  %s282_s2 = inlined_call_operand.vmem [shape: f32[1,2], index: 2, kind: input, shape index: {}]   ;;  %s283_s3 = inlined_call_operand.<no memory space> [shape: f32[1], index: 3, kind: input, shape index: {}]   ;;  %s284_s4 = inlined_call_operand.vmem [shape: f32[4,128], index: 4, kind: input, shape index: {}]   ;;  %s285_s5 = inlined_call_operand.hbm [shape: f32[1,128], index: 5, kind: output, shape index: {}]  }
   0x1   :  { %12 = vsyncpa [#allocation7], 0  ;;  %s30_s20 = sshll.u32 %s281_s1, 4  ;;  %s31_s20 = int_to_ptr.vmem [resolvable:$true] %s30_s20 }
   0x2   :  { %13 = vsyncpa [#allocation4], 0  ;;  %s20_s23 = sshll.u32 %s280_s0, 4  ;;  %s155_s24 = scalar_lea.vmem %s31_s20, 16  ;;  %s21_s23 = int_to_ptr.vmem [resolvable:$true] %s20_s23 }
   0x3   :  { %p156_p0 = scmp.ne.s32.totalorder %s31_s20, %s155_s24  ;;  %p160_p1 = scmp.lt.s32.totalorder %s31_s20, %s31_s20 }
   0x4   :  { %p161_p2 = scmp.lt.s32.totalorder %s155_s24, %s155_s24 }
   0x6   :  { %p162_p3 = por %p161_p2, %p160_p1 }
   0x8   :  { %p163_p4 = pnand %p162_p3, %p156_p0 }
   0xa   :  { %166 = shalt.err (!%p163_p4)
}
   0xb   :  { %s219_s25 = smov [#allocation6]   ;;  %s167_s26 = scalar_lea.vmem %s21_s23, 32 }
   0xc   :  { %33 = dma.vmem_to_smem %s31_s20, 16, %s219_s25, [#allocation7]  }
   0xd   :  { %p168_p5 = scmp.ne.s32.totalorder %s21_s23, %s167_s26  ;;  %p172_p6 = scmp.lt.s32.totalorder %s21_s23, %s21_s23 }
   0xe   :  { %p173_p7 = scmp.lt.s32.totalorder %s167_s26, %s167_s26 }
  0x10   :  { %p174_p8 = por %p173_p7, %p172_p6 }
  0x12   :  { %p175_p9 = pnand %p174_p8, %p168_p5 }
  0x14   :  { %178 = shalt.err (!%p175_p9)
}
  0x15   :  { %s220_s1 = smov [#allocation3]   ;;  %s40_s28 = sshll.u32 %s282_s2, 4  ;;  %s41_s28 = int_to_ptr.vmem [resolvable:$true] %s40_s28 }
  0x16   :  { %23 = dma.vmem_to_smem %s21_s23, 32, %s220_s1, [#allocation5]  }
  0x17   :  { %s179_s29 = scalar_lea.vmem %s41_s28, 16  ;;  %p184_p11 = scmp.lt.s32.totalorder %s41_s28, %s41_s28 }
  0x18   :  { %p180_p10 = scmp.ne.s32.totalorder %s41_s28, %s179_s29  ;;  %p185_p12 = scmp.lt.s32.totalorder %s179_s29, %s179_s29 }
  0x1a   :  { %p186_p13 = por %p185_p12, %p184_p11 }
  0x1c   :  { %p187_p0 = pnand %p186_p13, %p180_p10 }
  0x1e   :  { %190 = shalt.err (!%p187_p0)
}
  0x1f   :  { %s221_s30 = smov [#allocation8]  }
  0x20   :  { %43 = dma.vmem_to_smem %s41_s28, 16, %s221_s30, [#allocation7]  }
  0x21   :  { %213 = dma.done.wait [#allocation5], 32  }
  0x22   :  { %214 = vsyncadd [#allocation5], 4294967264 }
  0x23   :  { %215 = dma.done.wait [#allocation7], 32  }
  0x24   :  { %216 = vsyncadd [#allocation7], 4294967264 }
  0x25   :  { %57 = sfence }
  0x26   :  { %s59_s6 = sld [smem:[#allocation3]]  ;;  %s142_s7 = sld [smem:[#allocation3 + $0x1]]  ;;  %v58_v0 = vld [vmem:[%s284_s4] sm:$0xf]  ;;  %v123_v39 = vstv %s283_s3 }
  0x27   :  { %s143_s8 = sld [smem:[#allocation3 + $0x2]]  ;;  %s144_s9 = sld [smem:[#allocation3 + $0x3]] }
  0x28   :  { %s145_s2 = sld [smem:[#allocation3 + $0x80]]  ;;  %s146_s10 = sld [smem:[#allocation3 + $0x81]] }
  0x29   :  { %s147_s11 = sld [smem:[#allocation3 + $0x82]]  ;;  %s148_s14 = sld [smem:[#allocation3 + $0x83]] }
  0x2a   :  { %s83_s15 = sld [smem:[#allocation6]]  ;;  %s149_s16 = sld [smem:[#allocation6 + $0x1]] }
  0x2b   :  { %s115_s4 = sld [smem:[#allocation8]]  ;;  %s150_s17 = sld [smem:[#allocation8 + $0x1]] }
  0x2c   :  { %v60_v1 = vstv %s59_s6  ;;  %v63_v2 = vstv %s142_s7  ;;  %s222_s20 = smov [#allocation9]  }
  0x2d   :  { %v61_v3 = vmul.f32 %v60_v1, %v58_v0  ;;  %v64_v4 = vmul.f32 %v63_v2, %v58_v0  ;;  %v70_v5 = vstv %s143_s8  ;;  %v77_v6 = vstv %s144_s9  ;;  %s132_s21 = sshll.u32 %s222_s20, 4  ;;  %s133_s21 = int_to_ptr.vmem [resolvable:$true] %s132_s21 }
  0x2e   :  { %v71_v7 = vmul.f32 %v70_v5, %v58_v0  ;;  %v78_v8 = vmul.f32 %v77_v6, %v58_v0  ;;  %v87_v9 = vstv %s145_s2  ;;  %v90_v11 = vstv %s146_s10  ;;  %s191_s22 = scalar_lea.vmem %s133_s21, 16  ;;  %s195_s23 = scalar_lea.vmem %s133_s21, 32 }
  0x2f   :  { %v66_v10 = vrot.slane %v64_v4, 1  ;;  %v97_v12 = vstv %s147_s11  ;;  %v88_v14 = vmul.f32 %v87_v9, %v58_v0  ;;  %v91_v15 = vmul.f32 %v90_v11, %v58_v0  ;;  %p192_p1 = scmp.ne.s32.totalorder %s133_s21, %s191_s22  ;;  %p196_p2 = scmp.lt.s32.totalorder %s133_s21, %s133_s21 }
  0x30   :  { %v73_v13 = vrot.slane %v71_v7, 2  ;;  %v98_v16 = vmul.f32 %v97_v12, %v58_v0  ;;  %v80_v18 = vrot.slane %v78_v8, 3  ;;  %v104_v19 = vstv %s148_s14  ;;  %p197_p3 = scmp.lt.s32.totalorder %s195_s23, %s191_s22 }
  0x31   :  { %v68_v17 = vadd.f32 %v66_v10, %v61_v3  ;;  %v93_v20 = vrot.slane %v91_v15, 1  ;;  %v105_v22 = vmul.f32 %v104_v19, %v58_v0  ;;  %v84_v24 = vstv %s83_s15 }
  0x32   :  { %v100_v21 = vrot.slane %v98_v16, 2  ;;  %v111_v30 = vstv %s149_s16  ;;  %v116_v33 = vstv %s115_s4  ;;  %v119_v35 = vstv %s150_s17  ;;  %p198_p4 = por %p197_p3, %p196_p2 }
  0x33   :  { %v75_v23 = vadd.f32 %v73_v13, %v68_v17  ;;  %v95_v25 = vadd.f32 %v93_v20, %v88_v14  ;;  %v107_v26 = vrot.slane %v105_v22, 3 }
  0x34   :  { %p199_p5 = pnand %p198_p4, %p192_p1 }
  0x35   :  { %v82_v27 = vadd.f32 %v80_v18, %v75_v23  ;;  %v102_v28 = vadd.f32 %v100_v21, %v95_v25 }
  0x37   :  { %v85_v29 = vadd.f32 %v84_v24, %v82_v27  ;;  %v109_v31 = vadd.f32 %v107_v26, %v102_v28 }
  0x39   :  { %v113_v32 = vmax.f32 %v85_v29, 0.0  ;;  %v112_v34 = vadd.f32 %v111_v30, %v109_v31 }
  0x3b   :  { %v114_v36 = vmax.f32 %v112_v34, 0.0  ;;  %v117_v37 = vmul.f32 %v116_v33, %v113_v32 }
  0x3d   :  { %v120_v38 = vmul.f32 %v119_v35, %v114_v36 }
  0x3f   :  { %v121_v40 = vadd.f32 %v120_v38, %v117_v37 }
  0x41   :  { %v124_v41 = vadd.f32 %v123_v39, %v121_v40 }
  0x43   :  { %125 = vst [vmem:[#allocation9] sm:$0x1] %v124_v41 }
  0x44   :  { %202 = shalt.err (!%p199_p5)
}
  0x45   :  { %s203_s26 = scalar_lea.hbm %s285_s5, 16 }
  0x46   :  { %p204_p6 = scmp.ne.s32.totalorder %s285_s5, %s203_s26  ;;  %p207_p7 = scmp.lt.u32.totalorder %s203_s26, %s285_s5 }
  0x48   :  { %p209_p8 = pnand %p207_p7, %p204_p6 }
  0x4a   :  { %212 = shalt.err (!%p209_p8)
}
  0x4b   :  { %135 = dma.vmem_to_hbm [thread:$0]  %s133_s21, 16, %s285_s5, [#allocation4]  }
  0x4c   :  { %217 = dma.done.wait [#allocation4], 16  }
  0x4d   :  { %218 = vsyncadd [#allocation4], 4294967280 }
  0x4e   :  { %139 = vsyncpa [#allocation4], 1 }
  0x4f   :  { %140 = vsyncpa [#allocation5], 1 }
  0x50   :  { %141 = vsyncpa [#allocation7], 1 }

</bundles_post_ra>
